<compile_context>
chip_gen: v7x
topology: tpu7x:2x2x1
jax: 0.10.0
libtpu: 0.0.40
codegen_flags: <defaults>
</compile_context>

<pallas_src>
import functools

import jax
import jax.numpy as jnp
from jax.experimental import pallas as pl
from jax.experimental.pallas import tpu as pltpu

HIDDEN = 128
OUT_PAD = 128  # fc3 output padded to a full lane width


def _round_up(x, m):
    return (x + m - 1) // m * m


def policy_mlp_kernel(x_ref, w1_ref, b1_ref, w2_ref, b2_ref, w3_ref, b3_ref,
                      o_ref):
    """Fused 3-layer MLP tile: relu(relu(x@W1+b1)@W2+b2)@W3+b3.

    x_ref: (TILE_B, D) bf16.  Weights bf16, biases f32.  Output f32,
    lane-dense (TILE_B, 128) with the real logits in the first n_actions lanes.
    """
    x = x_ref[...]  # (tb, D) bf16
    h1 = jnp.dot(x, w1_ref[...], preferred_element_type=jnp.float32)
    h1 = jnp.maximum(h1 + b1_ref[...], 0.0)
    h2 = jnp.dot(h1.astype(jnp.bfloat16), w2_ref[...],
                 preferred_element_type=jnp.float32)
    h2 = jnp.maximum(h2 + b2_ref[...], 0.0)
    h3 = jnp.dot(h2.astype(jnp.bfloat16), w3_ref[...],
                 preferred_element_type=jnp.float32)
    o_ref[...] = (h3 + b3_ref[...]).astype(o_ref.dtype)


@functools.partial(jax.jit, static_argnames=("n_actions", "tile_b"))
def policy_forward(state, packed, *, n_actions, tile_b=512):
    """state: (B, input_dims) f32.  packed: kernel-ready params (see pack_params).

    Returns raw logits (B, n_actions) in f32 — same semantics as the PyTorch
    forward().
    """
    assert tile_b % 16 == 0, "tile_b must be a multiple of 16 (bf16 sublanes)"
    w1, b1 = packed["w1"], packed["b1"]
    w2, b2 = packed["w2"], packed["b2"]
    w3, b3 = packed["w3"], packed["b3"]

    B, D = state.shape
    H = w1.shape[1]
    OUT = w3.shape[1]  # 128 (padded head)

    # Pick a batch tile (multiple of 16) and pad the batch up to it.
    tb = min(tile_b, _round_up(B, 16))
    Bp = _round_up(B, tb)
    if Bp != B:
        state = jnp.pad(state, ((0, Bp - B), (0, 0)))
    x_bf16 = state.astype(jnp.bfloat16)

    grid = (Bp // tb,)

    out = pl.pallas_call(
        policy_mlp_kernel,
        out_shape=jax.ShapeDtypeStruct((Bp, OUT), jnp.float32),
        grid_spec=pltpu.PrefetchScalarGridSpec(
            num_scalar_prefetch=0,
            grid=grid,
            in_specs=[
                pl.BlockSpec((tb, D), lambda i: (i, 0)),   # x: tiled over batch
                pl.BlockSpec((D, H), lambda i: (0, 0)),    # w1: VMEM-resident
                pl.BlockSpec((1, H), lambda i: (0, 0)),    # b1
                pl.BlockSpec((H, H), lambda i: (0, 0)),    # w2
                pl.BlockSpec((1, H), lambda i: (0, 0)),    # b2
                pl.BlockSpec((H, OUT), lambda i: (0, 0)),  # w3 (padded head)
                pl.BlockSpec((1, OUT), lambda i: (0, 0)),  # b3 (padded head)
            ],
            out_specs=pl.BlockSpec((tb, OUT), lambda i: (i, 0)),
        ),
        compiler_params=pltpu.CompilerParams(
            dimension_semantics=("parallel",),  # shard batch tiles across TCs (v7x)
        ),
    )(x_bf16, w1, b1, w2, b2, w3, b3)

    return out[:B, :n_actions]


def init_params(key, input_dims, n_actions, hidden=HIDDEN):
    """PyTorch-style init: U(-1/sqrt(fan_in), 1/sqrt(fan_in)); f32 master params."""
    def linear(k, fan_in, fan_out):
        kw, kb = jax.random.split(k)
        bound = 1.0 / jnp.sqrt(jnp.float32(fan_in))
        w = jax.random.uniform(kw, (fan_in, fan_out), jnp.float32, -bound, bound)
        b = jax.random.uniform(kb, (1, fan_out), jnp.float32, -bound, bound)
        return w, b

    k1, k2, k3 = jax.random.split(key, 3)
    w1, b1 = linear(k1, input_dims, hidden)
    w2, b2 = linear(k2, hidden, hidden)
    w3, b3 = linear(k3, hidden, n_actions)
    return {"w1": w1, "b1": b1, "w2": w2, "b2": b2, "w3": w3, "b3": b3}


def pack_params(params, n_actions, out_pad=OUT_PAD):
    """Kernel-ready params: bf16 weights, f32 biases, fc3 zero-padded to 128 lanes."""
    w3 = params["w3"]
    b3 = params["b3"]
    pad = out_pad - n_actions
    w3p = jnp.pad(w3, ((0, 0), (0, pad)))
    b3p = jnp.pad(b3, ((0, 0), (0, pad)))
    return {
        "w1": params["w1"].astype(jnp.bfloat16),
        "b1": params["b1"].astype(jnp.float32),
        "w2": params["w2"].astype(jnp.bfloat16),
        "b2": params["b2"].astype(jnp.float32),
        "w3": w3p.astype(jnp.bfloat16),
        "b3": b3p.astype(jnp.float32),
    }


def reference_forward_f32(state, params):
    """Pure-f32 PyTorch-equivalent forward (semantic reference)."""
    h1 = jnp.maximum(state @ params["w1"] + params["b1"], 0.0)
    h2 = jnp.maximum(h1 @ params["w2"] + params["b2"], 0.0)
    return h2 @ params["w3"] + params["b3"]


def reference_forward_mirrored(state, packed, n_actions):
    """Pure-JAX reference that mirrors the kernel's bf16/f32 mixed precision."""
    x = state.astype(jnp.bfloat16)
    h1 = jnp.dot(x, packed["w1"], preferred_element_type=jnp.float32)
    h1 = jnp.maximum(h1 + packed["b1"], 0.0)
    h2 = jnp.dot(h1.astype(jnp.bfloat16), packed["w2"],
                 preferred_element_type=jnp.float32)
    h2 = jnp.maximum(h2 + packed["b2"], 0.0)
    h3 = jnp.dot(h2.astype(jnp.bfloat16), packed["w3"],
                 preferred_element_type=jnp.float32)
    return (h3 + packed["b3"])[:, :n_actions]


if __name__ == "__main__":
    key = jax.random.PRNGKey(0)
    k_params, k_state_small, k_state_big = jax.random.split(key, 3)

    # LunarLander-v2: observation dim 8, 4 discrete actions.
    input_dims, n_actions = 8, 4
    params = init_params(k_params, input_dims, n_actions)
    packed = pack_params(params, n_actions)

    # --- Small batch (matches the module's typical single/few-state use) ---
    batch = 2
    state = jax.random.normal(k_state_small, (batch, input_dims), jnp.float32)
    logits = policy_forward(state, packed, n_actions=n_actions)
    logits = jax.block_until_ready(logits)
    assert logits.shape == (batch, n_actions)

    ref_mirror = reference_forward_mirrored(state, packed, n_actions)
    assert jnp.allclose(logits, ref_mirror, atol=1e-4, rtol=1e-4), \
        "mismatch vs bf16-mirrored reference (small batch)"
    ref_f32 = reference_forward_f32(state, params)
    assert jnp.allclose(logits, ref_f32, atol=5e-2, rtol=5e-2), \
        "mismatch vs f32 reference (small batch)"

    # --- Larger batch: exercises multi-tile grid + VMEM-resident weights ---
    big_batch = 1024
    big_state = jax.random.normal(k_state_big, (big_batch, input_dims), jnp.float32)
    big_logits = policy_forward(big_state, packed, n_actions=n_actions, tile_b=256)
    big_logits = jax.block_until_ready(big_logits)
    assert big_logits.shape == (big_batch, n_actions)
    big_ref = reference_forward_mirrored(big_state, packed, n_actions)
    assert jnp.allclose(big_logits, big_ref, atol=1e-4, rtol=1e-4), \
        "mismatch vs bf16-mirrored reference (large batch)"

    print("KERNEL_OK")
</pallas_src>

<mosaic_0001>
module attributes {stable_mosaic.version = 11 : i64} {
  func.func @policy_mlp_kernel(%arg0: i32, %arg1: memref<16x8xbf16, #tpu.memory_space<vmem>>, %arg2: memref<8x128xbf16, #tpu.memory_space<vmem>>, %arg3: memref<1x128xf32, #tpu.memory_space<vmem>>, %arg4: memref<128x128xbf16, #tpu.memory_space<vmem>>, %arg5: memref<1x128xf32, #tpu.memory_space<vmem>>, %arg6: memref<128x128xbf16, #tpu.memory_space<vmem>>, %arg7: memref<1x128xf32, #tpu.memory_space<vmem>>, %arg8: memref<16x128xf32, #tpu.memory_space<vmem>>) attributes {dimension_semantics = [#tpu.dimension_semantics<parallel>], iteration_bounds = array<i64: 1>, scalar_prefetch = 0 : i64, scratch_operands = 0 : i64, tpu.core_type = #tpu.core_type<tc>, window_params = [{transform_indices = @transform_0, window_bounds = array<i64: 16, 8>}, {pipeline_mode = #tpu.pipeline_mode<synchronous>, transform_indices = @transform_1, window_bounds = array<i64: 8, 128>}, {pipeline_mode = #tpu.pipeline_mode<synchronous>, transform_indices = @transform_2, window_bounds = array<i64: 1, 128>}, {pipeline_mode = #tpu.pipeline_mode<synchronous>, transform_indices = @transform_3, window_bounds = array<i64: 128, 128>}, {pipeline_mode = #tpu.pipeline_mode<synchronous>, transform_indices = @transform_4, window_bounds = array<i64: 1, 128>}, {pipeline_mode = #tpu.pipeline_mode<synchronous>, transform_indices = @transform_5, window_bounds = array<i64: 128, 128>}, {pipeline_mode = #tpu.pipeline_mode<synchronous>, transform_indices = @transform_6, window_bounds = array<i64: 1, 128>}, {transform_indices = @transform_7, window_bounds = array<i64: 16, 128>}]} {
    %c0 = arith.constant 0 : index
    %c0_0 = arith.constant 0 : index
    %0 = vector.load %arg1[%c0, %c0_0] : memref<16x8xbf16, #tpu.memory_space<vmem>>, vector<16x8xbf16>
    %c0_1 = arith.constant 0 : index
    %c0_2 = arith.constant 0 : index
    %1 = vector.load %arg2[%c0_1, %c0_2] : memref<8x128xbf16, #tpu.memory_space<vmem>>, vector<8x128xbf16>
    %cst = arith.constant dense<0.000000e+00> : vector<16x128xf32>
    %2 = tpu.matmul %0, %1, %cst {dimension_numbers = #tpu.dot_dimension_numbers<[1], [0], [0], [1], [0, 0, 1, 1], [], []>} : vector<16x8xbf16>, vector<8x128xbf16>, vector<16x128xf32> -> vector<16x128xf32>
    %c0_3 = arith.constant 0 : index
    %c0_4 = arith.constant 0 : index
    %3 = vector.load %arg3[%c0_3, %c0_4] : memref<1x128xf32, #tpu.memory_space<vmem>>, vector<1x128xf32>
    %4 = vector.broadcast %3 : vector<1x128xf32> to vector<16x128xf32>
    %5 = arith.addf %2, %4 : vector<16x128xf32>
    %cst_5 = arith.constant 0.000000e+00 : f32
    %6 = vector.broadcast %cst_5 : f32 to vector<16x128xf32>
    %7 = arith.maximumf %5, %6 : vector<16x128xf32>
    %8 = arith.truncf %7 : vector<16x128xf32> to vector<16x128xbf16>
    %c0_6 = arith.constant 0 : index
    %c0_7 = arith.constant 0 : index
    %9 = vector.load %arg4[%c0_6, %c0_7] : memref<128x128xbf16, #tpu.memory_space<vmem>>, vector<128x128xbf16>
    %cst_8 = arith.constant dense<0.000000e+00> : vector<16x128xf32>
    %10 = tpu.matmul %8, %9, %cst_8 {dimension_numbers = #tpu.dot_dimension_numbers<[1], [0], [0], [1], [0, 0, 1, 1], [], []>} : vector<16x128xbf16>, vector<128x128xbf16>, vector<16x128xf32> -> vector<16x128xf32>
    %c0_9 = arith.constant 0 : index
    %c0_10 = arith.constant 0 : index
    %11 = vector.load %arg5[%c0_9, %c0_10] : memref<1x128xf32, #tpu.memory_space<vmem>>, vector<1x128xf32>
    %12 = vector.broadcast %11 : vector<1x128xf32> to vector<16x128xf32>
    %13 = arith.addf %10, %12 : vector<16x128xf32>
    %cst_11 = arith.constant 0.000000e+00 : f32
    %14 = vector.broadcast %cst_11 : f32 to vector<16x128xf32>
    %15 = arith.maximumf %13, %14 : vector<16x128xf32>
    %16 = arith.truncf %15 : vector<16x128xf32> to vector<16x128xbf16>
    %c0_12 = arith.constant 0 : index
    %c0_13 = arith.constant 0 : index
    %17 = vector.load %arg6[%c0_12, %c0_13] : memref<128x128xbf16, #tpu.memory_space<vmem>>, vector<128x128xbf16>
    %cst_14 = arith.constant dense<0.000000e+00> : vector<16x128xf32>
    %18 = tpu.matmul %16, %17, %cst_14 {dimension_numbers = #tpu.dot_dimension_numbers<[1], [0], [0], [1], [0, 0, 1, 1], [], []>} : vector<16x128xbf16>, vector<128x128xbf16>, vector<16x128xf32> -> vector<16x128xf32>
    %c0_15 = arith.constant 0 : index
    %c0_16 = arith.constant 0 : index
    %19 = vector.load %arg7[%c0_15, %c0_16] : memref<1x128xf32, #tpu.memory_space<vmem>>, vector<1x128xf32>
    %20 = vector.broadcast %19 : vector<1x128xf32> to vector<16x128xf32>
    %21 = arith.addf %18, %20 : vector<16x128xf32>
    %c0_17 = arith.constant 0 : index
    %c0_18 = arith.constant 0 : index
    %22 = vector.load %arg8[%c0_17, %c0_18] : memref<16x128xf32, #tpu.memory_space<vmem>>, vector<16x128xf32>
    tpu.vector_store %arg8[%c0_17, %c0_18], %21 {strides = array<i32>} : memref<16x128xf32, #tpu.memory_space<vmem>>, vector<16x128xf32>,
    return
  }
  func.func @transform_0(%arg0: i32) -> (i32, i32) {
    %c0_i32 = arith.constant 0 : i32
    %c0_i32_0 = arith.constant 0 : i32
    return %arg0, %c0_i32 : i32, i32
  }
  func.func @transform_1(%arg0: i32) -> (i32, i32) {
    %c0_i32 = arith.constant 0 : i32
    %c0_i32_0 = arith.constant 0 : i32
    %c0_i32_1 = arith.constant 0 : i32
    return %c0_i32, %c0_i32_0 : i32, i32
  }
  func.func @transform_2(%arg0: i32) -> (i32, i32) {
    %c0_i32 = arith.constant 0 : i32
    %c0_i32_0 = arith.constant 0 : i32
    %c0_i32_1 = arith.constant 0 : i32
    return %c0_i32, %c0_i32_0 : i32, i32
  }
  func.func @transform_3(%arg0: i32) -> (i32, i32) {
    %c0_i32 = arith.constant 0 : i32
    %c0_i32_0 = arith.constant 0 : i32
    %c0_i32_1 = arith.constant 0 : i32
    return %c0_i32, %c0_i32_0 : i32, i32
  }
  func.func @transform_4(%arg0: i32) -> (i32, i32) {
    %c0_i32 = arith.constant 0 : i32
    %c0_i32_0 = arith.constant 0 : i32
    %c0_i32_1 = arith.constant 0 : i32
    return %c0_i32, %c0_i32_0 : i32, i32
  }
  func.func @transform_5(%arg0: i32) -> (i32, i32) {
    %c0_i32 = arith.constant 0 : i32
    %c0_i32_0 = arith.constant 0 : i32
    %c0_i32_1 = arith.constant 0 : i32
    return %c0_i32, %c0_i32_0 : i32, i32
  }
  func.func @transform_6(%arg0: i32) -> (i32, i32) {
    %c0_i32 = arith.constant 0 : i32
    %c0_i32_0 = arith.constant 0 : i32
    %c0_i32_1 = arith.constant 0 : i32
    return %c0_i32, %c0_i32_0 : i32, i32
  }
  func.func @transform_7(%arg0: i32) -> (i32, i32) {
    %c0_i32 = arith.constant 0 : i32
    %c0_i32_0 = arith.constant 0 : i32
    return %arg0, %c0_i32 : i32, i32
  }
}

</mosaic_0001>

<bundles_post_ra>
// kernel: policy_forward.1
= control target key start
LH: loop header
LB: loop body
LE: loop exit
PB: predicated region body
PF: predicated region fallthrough
CT: control target
= control target key end

     0   :  { %12 = vsyncpa [#allocation3], 0  ;;  %s629_s0 = inlined_call_operand.vmem [shape: bf16[16,8], index: 0, kind: input, shape index: {}]   ;;  %s630_s1 = inlined_call_operand.vmem [shape: bf16[8,128], index: 1, kind: input, shape index: {}]   ;;  %s631_s2 = inlined_call_operand.vmem [shape: f32[1,128], index: 2, kind: input, shape index: {}]   ;;  %s632_s3 = inlined_call_operand.hbm [shape: bf16[128,128], index: 3, kind: input, shape index: {}]   ;;  %s633_s4 = inlined_call_operand.vmem [shape: f32[1,128], index: 4, kind: input, shape index: {}]   ;;  %s634_s5 = inlined_call_operand.hbm [shape: bf16[128,128], index: 5, kind: input, shape index: {}]   ;;  %s635_s6 = inlined_call_operand.vmem [shape: f32[1,128], index: 6, kind: input, shape index: {}]   ;;  %s636_s7 = inlined_call_operand.vmem [shape: f32[16,128], index: 7, kind: output, shape index: {}]  }
   0x1   :  { %13 = vsyncpa [#allocation5], 0  ;;  %s515_s24 = smov [#allocation2]   ;;  %s467_s28 = scalar_lea.hbm %s632_s3, 1024 }
   0x2   :  { %s25_s25 = sshll.u32 %s515_s24, 4  ;;  %p468_p0 = scmp.ne.s32.totalorder %s632_s3, %s467_s28  ;;  %s26_s25 = int_to_ptr.vmem [resolvable:$true] %s25_s25 }
   0x3   :  { %p471_p1 = scmp.lt.u32.totalorder %s467_s28, %s632_s3 }
   0x5   :  { %p473_p2 = pnand %p471_p1, %p468_p0 }
   0x7   :  { %476 = shalt.err (!%p473_p2)
}
   0x8   :  { %s477_s10 = scalar_lea.vmem %s26_s25, 1024  ;;  %p482_p4 = scmp.lt.s32.totalorder %s26_s25, %s26_s25 }
   0x9   :  { %p478_p3 = scmp.ne.s32.totalorder %s26_s25, %s477_s10  ;;  %p483_p5 = scmp.lt.s32.totalorder %s477_s10, %s477_s10 }
   0xb   :  { %p484_p6 = por %p483_p5, %p482_p4 }
   0xd   :  { %p485_p7 = pnand %p484_p6, %p478_p3 }
   0xf   :  { %488 = shalt.err (!%p485_p7)
}
  0x10   :  { %s516_s11 = smov 64   ;;  %s517_s12 = smov 4  }
  0x11   :  { %31 = dma.hbm_to_vmem [thread:$0]  %s632_s3, 1024, %s26_s25, [#allocation3], %s516_s11, %s516_s11, %s517_s12  }
  0x12   :  { %s518_s15 = smov [#allocation4]   ;;  %s489_s19 = scalar_lea.hbm %s634_s5, 1024 }
  0x13   :  { %s39_s16 = sshll.u32 %s518_s15, 4  ;;  %p490_p8 = scmp.ne.s32.totalorder %s634_s5, %s489_s19  ;;  %s40_s16 = int_to_ptr.vmem [resolvable:$true] %s39_s16 }
  0x14   :  { %p493_p9 = scmp.lt.u32.totalorder %s489_s19, %s634_s5 }
  0x16   :  { %p495_p10 = pnand %p493_p9, %p490_p8 }
  0x18   :  { %498 = shalt.err (!%p495_p10)
}
  0x19   :  { %s499_s24 = scalar_lea.vmem %s40_s16, 1024  ;;  %p504_p12 = scmp.lt.s32.totalorder %s40_s16, %s40_s16 }
  0x1a   :  { %p500_p11 = scmp.ne.s32.totalorder %s40_s16, %s499_s24  ;;  %p505_p13 = scmp.lt.s32.totalorder %s499_s24, %s499_s24 }
  0x1c   :  { %p506_p0 = por %p505_p13, %p504_p12 }
  0x1e   :  { %p507_p1 = pnand %p506_p0, %p500_p11 }
  0x20   :  { %510 = shalt.err (!%p507_p1)
}
  0x21   :  { %45 = dma.hbm_to_vmem [thread:$0]  %s634_s5, 1024, %s40_s16, [#allocation5], %s516_s11, %s516_s11, %s517_s12  }
  0x22   :  { %511 = dma.done.wait [#allocation3], 1024  }
  0x23   :  { %512 = vsyncadd [#allocation3], 4294966272 }
  0x24   :  { %513 = dma.done.wait [#allocation5], 1024  }
  0x25   :  { %514 = vsyncadd [#allocation5], 4294966272  ;;  %v519_v0 = vmov 0.0   ;;  %vm520_vm0 = vmmov 0   ;;  %vm74_vm1 = vcmask 1043456   ;;  %v450_v3 = vld [vmem:[%s629_s0] sm:$0xff]  }
  0x26   :  { %398 = vmatprep.subr.bf16.mxu0 %v519_v0  ;;  %400 = vmatprep.mubr.msk.bf16.mxu0 %vm520_vm0, %v519_v0  ;;  %v57_v1 = vld [vmem:[%s630_s1] sm:$0xf]  ;;  %vm70_vm2 = vcmask 64512   ;;  %v452_v5 = vld [vmem:[#allocation2 + $0x8] sm:$0xff]   ;;  %v453_v6 = vld [vmem:[#allocation2 + $0x10] sm:$0xff]  }
  0x27   :  { %404 = vmatprep.subr.bf16.mxu1 %v519_v0  ;;  %420 = vmatprep.mubr.msk.bf16.mxu1 %vm520_vm0, %v519_v0  ;;  %v76_v2 = vsel %vm74_vm1, %v57_v1, 0  ;;  %v451_v4 = vld [vmem:[#allocation2] sm:$0xff]   ;;  %v454_v7 = vld [vmem:[#allocation2 + $0x18] sm:$0xff]   ;;  %v456_v9 = vld [vmem:[#allocation2 + $0x28] sm:$0xff]  }
  0x28   :  { %399 = vmatpush3.bf16.msra.mxu0 %v76_v2  ;;  %405 = vmatpush3.bf16.msra.mxu1 %v451_v4  ;;  %v455_v8 = vld [vmem:[#allocation2 + $0x20] sm:$0xff]   ;;  %v457_v10 = vld [vmem:[#allocation2 + $0x30] sm:$0xff]   ;;  %v458_v11 = vld [vmem:[#allocation2 + $0x38] sm:$0xff]  }
  0x29   :  { %424 = vmatprep.subr.bf16.mxu0 %v519_v0  ;;  %406 = vmatprep.subr.bf16.mxu1 %v519_v0  ;;  %v459_v12 = vld [vmem:[#allocation4] sm:$0xff]   ;;  %v460_v13 = vld [vmem:[#allocation4 + $0x8] sm:$0xff]   ;;  %v461_v14 = vld [vmem:[#allocation4 + $0x10] sm:$0xff]  }
  0x2a   :  { %v462_v15 = vld [vmem:[#allocation4 + $0x18] sm:$0xff]   ;;  %v463_v16 = vld [vmem:[#allocation4 + $0x20] sm:$0xff]   ;;  %v464_v17 = vld [vmem:[#allocation4 + $0x28] sm:$0xff]  }
  0x2b   :  { %401 = vmatmul.mubr.msk.bf16.vlgmr.msra.gmra.mrb[0].mxu0 %vm70_vm2, %v450_v3  ;;  %v357_v18 = vld [vmem:[%s631_s2] ss:$0 sm:$0xff]  ;;  %v465_v28 = vld [vmem:[#allocation4 + $0x30] sm:$0xff]   ;;  %v466_v29 = vld [vmem:[#allocation4 + $0x38] sm:$0xff]  }
  0x2c   :  { %440 = vmatprep.mubr.msk.bf16.mxu0 %vm520_vm0, %v519_v0  ;;  %407 = vmatpush3.bf16.msra.mxu1 %v452_v5  ;;  %v360_v30 = vld [vmem:[%s633_s4] ss:$0 sm:$0xff] }
  0x2d   :  { %408 = vmatprep.subr.bf16.mxu1 %v519_v0  ;;  %425 = vmatpush3.bf16.msra.mxu0 %v459_v12  ;;  %v369_v40 = vld [vmem:[%s635_s6] ss:$0 sm:$0xff] }
  0x2e   :  { %426 = vmatprep.subr.bf16.mxu0 %v519_v0 }
  0x30   :  { %409 = vmatpush3.bf16.msra.mxu1 %v453_v6 }
  0x31   :  { %410 = vmatprep.subr.bf16.mxu1 %v519_v0  ;;  %427 = vmatpush3.bf16.msra.mxu0 %v460_v13 }
  0x32   :  { %428 = vmatprep.subr.bf16.mxu0 %v519_v0 }
  0x34   :  { %411 = vmatpush3.bf16.msra.mxu1 %v454_v7 }
  0x35   :  { %412 = vmatprep.subr.bf16.mxu1 %v519_v0  ;;  %429 = vmatpush3.bf16.msra.mxu0 %v461_v14 }
  0x36   :  { %430 = vmatprep.subr.bf16.mxu0 %v519_v0 }
  0x38   :  { %413 = vmatpush3.bf16.msra.mxu1 %v455_v8 }
  0x39   :  { %414 = vmatprep.subr.bf16.mxu1 %v519_v0  ;;  %431 = vmatpush3.bf16.msra.mxu0 %v462_v15 }
  0x3a   :  { %432 = vmatprep.subr.bf16.mxu0 %v519_v0 }
  0x3c   :  { %415 = vmatpush3.bf16.msra.mxu1 %v456_v9 }
  0x3d   :  { %416 = vmatprep.subr.bf16.mxu1 %v519_v0  ;;  %433 = vmatpush3.bf16.msra.mxu0 %v463_v16 }
  0x3e   :  { %434 = vmatprep.subr.bf16.mxu0 %v519_v0 }
  0x40   :  { %417 = vmatpush3.bf16.msra.mxu1 %v457_v10 }
  0x41   :  { %418 = vmatprep.subr.bf16.mxu1 %v519_v0  ;;  %435 = vmatpush3.bf16.msra.mxu0 %v464_v17 }
  0x42   :  { %436 = vmatprep.subr.bf16.mxu0 %v519_v0 }
  0x44   :  { %419 = vmatpush3.bf16.msra.mxu1 %v458_v11 }
  0x45   :  { %437 = vmatpush3.bf16.msra.mxu0 %v465_v28 }
  0x46   :  { %438 = vmatprep.subr.bf16.mxu0 %v519_v0 }
  0x49   :  { %439 = vmatpush3.bf16.msra.mxu0 %v466_v29 }
  0xfe   :  { %v112_v19 = vpop.f32.mrb[0].mxu0 }
  0xff   :  { %v113_v20 = vadd.f32 %v357_v18, %v112_v19  ;;  %v402_v21 = vpop.f32.mrb[1].mxu0 }
 0x100   :  { %v115_v22 = vpop.f32.mrb[2].mxu0 }
 0x101   :  { %v116_v23 = vadd.f32 %v357_v18, %v115_v22  ;;  %v403_v24 = vpop.f32.mrb[3].mxu0  ;;  %v119_v25 = vmax.f32 %v113_v20, 0.0 }
 0x103   :  { %v120_v26 = vmax.f32 %v116_v23, 0.0 }
 0x105   :  { %v121_v27 = vpack.c.bf16 %v120_v26, %v119_v25 }
 0x107   :  { %421 = vmatmul.mubr.bf16.vlgmr.msra.gmra.mrb[0].mxu1 %v121_v27 }
 0x1da   :  { %v227_v31 = vpop.f32.mrb[0].mxu1 }
 0x1db   :  { %v228_v32 = vadd.f32 %v360_v30, %v227_v31  ;;  %v422_v33 = vpop.f32.mrb[1].mxu1 }
 0x1dc   :  { %v230_v34 = vpop.f32.mrb[2].mxu1 }
 0x1dd   :  { %v231_v35 = vadd.f32 %v360_v30, %v230_v34  ;;  %v423_v36 = vpop.f32.mrb[3].mxu1  ;;  %v234_v37 = vmax.f32 %v228_v32, 0.0 }
 0x1df   :  { %v235_v38 = vmax.f32 %v231_v35, 0.0 }
 0x1e1   :  { %v236_v39 = vpack.c.bf16 %v235_v38, %v234_v37 }
 0x1e3   :  { %441 = vmatmul.mubr.bf16.vlgmr.msra.gmra.mrb[4].mxu0 %v236_v39 }
 0x2b6   :  { %v342_v41 = vpop.f32.mrb[4].mxu0 }
 0x2b7   :  { %v343_v42 = vadd.f32 %v369_v40, %v342_v41  ;;  %v442_v43 = vpop.f32.mrb[5].mxu0 }
 0x2b8   :  { %v345_v44 = vpop.f32.mrb[6].mxu0 }
 0x2b9   :  { %349 = vst [vmem:[%s636_s7] sm:$0xff] %v343_v42  ;;  %v346_v45 = vadd.f32 %v369_v40, %v345_v44  ;;  %v443_v46 = vpop.f32.mrb[7].mxu0 }
 0x2bb   :  { %350 = vst [vmem:[%s636_s7 + $0x8] sm:$0xff] %v346_v45 }
 0x2bc   :  { %355 = vsyncpa [#allocation3], 1 }
 0x2bd   :  { %356 = vsyncpa [#allocation5], 1 }

</bundles_post_ra>
